<compile_context>
chip_gen: v6e
topology: v6e:2x2x1
jax: 0.10.0
libtpu: 0.0.40
codegen_flags: <defaults>
</compile_context>

<pallas_src>
import math

import jax
import jax.numpy as jnp
from jax import lax
from jax.experimental import pallas as pl
from jax.experimental.pallas import tpu as pltpu

# lhs (out, in) x rhs (batch, in), contracting the `in` axis of both -> (out, batch)
_NT_DIMS = (((1,), (1,)), ((), ()))

_MAX_TB = 4096          # per-step VMEM ~2 MB double-buffered; far below 32 MiB
_MIN_PALLAS_BATCH = 256  # below this, fused XLA beats pad-to-128 + kernel launch


def actor_kernel(s_ref, w1_ref, b1_ref, w2_ref, b2_ref, w3_ref, b3_ref, out_ref):
    # s tile arrives in natural (TB, state_dim) layout; weights in PyTorch
    # (out_features, in_features) layout.  MXU operands bf16, accumulate f32,
    # elementwise bias/ReLU/tanh in f32.  All intermediates are (features, TB)
    # so the batch tile stays on the lane axis (lane-dense output store).
    x = s_ref[...].astype(jnp.bfloat16)
    # Layer 1: h1 = relu(W1 @ x^T + b1)  -> (hidden, TB)
    h1 = lax.dot_general(w1_ref[...], x, _NT_DIMS, preferred_element_type=jnp.float32)
    h1 = jnp.maximum(h1 + b1_ref[...], 0.0)
    # Layer 2: h2 = relu(W2 @ h1 + b2)   -> (hidden, TB)
    h2 = jnp.dot(w2_ref[...], h1.astype(jnp.bfloat16),
                 preferred_element_type=jnp.float32)
    h2 = jnp.maximum(h2 + b2_ref[...], 0.0)
    # Layer 3: a = tanh(W3 @ h2 + b3)    -> (action_dim, TB)
    a = jnp.dot(w3_ref[...], h2.astype(jnp.bfloat16),
                preferred_element_type=jnp.float32)
    out_ref[...] = jnp.tanh(a + b3_ref[...]).astype(out_ref.dtype)


def _round_up(x, m):
    return ((x + m - 1) // m) * m


@jax.jit
def _actor_pallas(s, w1, b1, w2, b2, w3, b3):
    """s: (batch, state_dim); weights in PyTorch (out, in) layout, biases (out,).
    Returns (batch, action_dim) float32."""
    batch, state_dim = s.shape
    hidden = w1.shape[0]
    action_dim = w3.shape[0]

    padded128 = _round_up(max(batch, 128), 128)
    if padded128 <= 2 * 128:
        tb = padded128                                    # single small tile
    else:
        # >=2 grid steps so ("parallel",) can shard the batch across both
        # TensorCores on v7x; tile capped so per-step work >> ~0.35us overhead.
        tb = min(_MAX_TB, _round_up(pl.cdiv(padded128, 2), 128))
    padded_batch = _round_up(padded128, tb)
    grid = (padded_batch // tb,)

    # Zero-pad the batch only — no host-side transpose of s.
    s_p = jnp.pad(s, ((0, padded_batch - batch), (0, 0)))

    # bf16 MXU operands; biases stay f32 column vectors (broadcast over lanes).
    w1b = w1.astype(jnp.bfloat16)
    w2b = w2.astype(jnp.bfloat16)
    w3b = w3.astype(jnp.bfloat16)
    b1c = b1.astype(jnp.float32).reshape(hidden, 1)
    b2c = b2.astype(jnp.float32).reshape(hidden, 1)
    b3c = b3.astype(jnp.float32).reshape(action_dim, 1)

    const = lambda i: (0, 0)   # weights/biases: same block every step -> VMEM-resident

    flops = 2 * padded_batch * (state_dim * hidden + hidden * hidden + hidden * action_dim)
    bytes_accessed = (int(s_p.size) * s_p.dtype.itemsize
                      + 4 * action_dim * padded_batch
                      + sum(int(a.size) * a.dtype.itemsize
                            for a in (w1b, b1c, w2b, b2c, w3b, b3c)))

    out_t = pl.pallas_call(
        actor_kernel,
        out_shape=jax.ShapeDtypeStruct((action_dim, padded_batch), jnp.float32),
        grid=grid,
        in_specs=[
            pl.BlockSpec((tb, state_dim), lambda i: (i, 0)),   # activations walk the batch
            pl.BlockSpec((hidden, state_dim), const),
            pl.BlockSpec((hidden, 1), const),
            pl.BlockSpec((hidden, hidden), const),
            pl.BlockSpec((hidden, 1), const),
            pl.BlockSpec((action_dim, hidden), const),
            pl.BlockSpec((action_dim, 1), const),
        ],
        out_specs=pl.BlockSpec((action_dim, tb), lambda i: (0, i)),
        compiler_params=pltpu.CompilerParams(
            dimension_semantics=("parallel",),      # megacore split on v7x
            vmem_limit_bytes=32 * 1024 * 1024,      # safe on v7x's 64 MiB physical
        ),
        cost_estimate=pl.CostEstimate(
            flops=flops,
            transcendentals=padded_batch * action_dim,   # tanh on the action head
            bytes_accessed=bytes_accessed,
        ),
    )(s_p, w1b, b1c, w2b, b2c, w3b, b3c)

    # (action_dim, padded_batch) -> (batch, action_dim); padded columns sliced off.
    return out_t.T[:batch]


@jax.jit
def _actor_xla(s, w1, b1, w2, b2, w3, b3):
    h = jnp.maximum(s @ w1.T + b1, 0.0)
    h = jnp.maximum(h @ w2.T + b2, 0.0)
    return jnp.tanh(h @ w3.T + b3)


def actor_forward(s, w1, b1, w2, b2, w3, b3, *, force_pallas=False):
    """Dispatcher: fused-XLA MLP for tiny batches, Pallas kernel otherwise."""
    if s.shape[0] < _MIN_PALLAS_BATCH and not force_pallas:
        return _actor_xla(s, w1, b1, w2, b2, w3, b3)
    return _actor_pallas(s, w1, b1, w2, b2, w3, b3)


def init_linear(key, in_features, out_features, dtype=jnp.float32):
    """torch.nn.Linear default init (uniform +/- 1/sqrt(fan_in)), PyTorch layout."""
    kw, kb = jax.random.split(key)
    bound = 1.0 / math.sqrt(in_features)
    w = jax.random.uniform(kw, (out_features, in_features), jnp.float32, -bound, bound)
    b = jax.random.uniform(kb, (out_features,), jnp.float32, -bound, bound)
    return w.astype(dtype), b.astype(dtype)


if __name__ == "__main__":
    state_dim, action_dim, hidden_width = 16, 4, 32
    batch = 2

    key = jax.random.PRNGKey(0)
    k_s, k_s2, k1, k2, k3 = jax.random.split(key, 5)

    s = jax.random.normal(k_s, (batch, state_dim), jnp.float32)
    w1, b1 = init_linear(k1, state_dim, hidden_width)
    w2, b2 = init_linear(k2, hidden_width, hidden_width)
    w3, b3 = init_linear(k3, hidden_width, action_dim)

    def ref(x):
        h = jnp.maximum(x @ w1.T + b1, 0.0)
        h = jnp.maximum(h @ w2.T + b2, 0.0)
        return jnp.tanh(h @ w3.T + b3)

    # 1) Pallas kernel on the small demo batch (forced; bf16 MXU -> relaxed tol).
    a = actor_forward(s, w1, b1, w2, b2, w3, b3, force_pallas=True)
    jax.block_until_ready(a)
    assert a.shape == (batch, action_dim), a.shape
    assert jnp.allclose(a, ref(s), atol=3e-2, rtol=3e-2), "pallas (small) mismatch"

    # 2) Pallas kernel with a multi-step batch grid (exercises tiling/megacore path).
    s_big = jax.random.normal(k_s2, (300, state_dim), jnp.float32)
    a_big = actor_forward(s_big, w1, b1, w2, b2, w3, b3)
    jax.block_until_ready(a_big)
    assert a_big.shape == (300, action_dim), a_big.shape
    assert jnp.allclose(a_big, ref(s_big), atol=3e-2, rtol=3e-2), "pallas (tiled) mismatch"

    # 3) Small-batch fused-XLA fallback path.
    a_xla = actor_forward(s, w1, b1, w2, b2, w3, b3)
    jax.block_until_ready(a_xla)
    assert jnp.allclose(a_xla, ref(s), atol=1e-5, rtol=1e-5), "xla fallback mismatch"

    print("KERNEL_OK")
</pallas_src>

<mosaic_0001>
module attributes {stable_mosaic.version = 11 : i64} {
  func.func @actor_kernel(%arg0: i32, %arg1: memref<128x16xf32, #tpu.memory_space<vmem>>, %arg2: memref<32x16xbf16, #tpu.memory_space<vmem>>, %arg3: memref<32x1xf32, #tpu.memory_space<vmem>>, %arg4: memref<32x32xbf16, #tpu.memory_space<vmem>>, %arg5: memref<32x1xf32, #tpu.memory_space<vmem>>, %arg6: memref<4x32xbf16, #tpu.memory_space<vmem>>, %arg7: memref<4x1xf32, #tpu.memory_space<vmem>>, %arg8: memref<4x128xf32, #tpu.memory_space<vmem>>) attributes {dimension_semantics = [#tpu.dimension_semantics<parallel>], iteration_bounds = array<i64: 1>, scalar_prefetch = 0 : i64, scratch_operands = 0 : i64, tpu.core_type = #tpu.core_type<tc>, window_params = [{transform_indices = @transform_0, window_bounds = array<i64: 128, 16>}, {pipeline_mode = #tpu.pipeline_mode<synchronous>, transform_indices = @transform_1, window_bounds = array<i64: 32, 16>}, {pipeline_mode = #tpu.pipeline_mode<synchronous>, transform_indices = @transform_2, window_bounds = array<i64: 32, 1>}, {pipeline_mode = #tpu.pipeline_mode<synchronous>, transform_indices = @transform_3, window_bounds = array<i64: 32, 32>}, {pipeline_mode = #tpu.pipeline_mode<synchronous>, transform_indices = @transform_4, window_bounds = array<i64: 32, 1>}, {pipeline_mode = #tpu.pipeline_mode<synchronous>, transform_indices = @transform_5, window_bounds = array<i64: 4, 32>}, {pipeline_mode = #tpu.pipeline_mode<synchronous>, transform_indices = @transform_6, window_bounds = array<i64: 4, 1>}, {transform_indices = @transform_7, window_bounds = array<i64: 4, 128>}]} {
    %c0 = arith.constant 0 : index
    %c0_0 = arith.constant 0 : index
    %0 = vector.load %arg1[%c0, %c0_0] : memref<128x16xf32, #tpu.memory_space<vmem>>, vector<128x16xf32>
    %1 = arith.truncf %0 : vector<128x16xf32> to vector<128x16xbf16>
    %c0_1 = arith.constant 0 : index
    %c0_2 = arith.constant 0 : index
    %2 = vector.load %arg2[%c0_1, %c0_2] : memref<32x16xbf16, #tpu.memory_space<vmem>>, vector<32x16xbf16>
    %cst = arith.constant dense<0.000000e+00> : vector<32x128xf32>
    %3 = tpu.matmul %2, %1, %cst {dimension_numbers = #tpu.dot_dimension_numbers<[1], [1], [0], [0], [0, 0, 1, 0], [], []>} : vector<32x16xbf16>, vector<128x16xbf16>, vector<32x128xf32> -> vector<32x128xf32>
    %c0_3 = arith.constant 0 : index
    %c0_4 = arith.constant 0 : index
    %4 = vector.load %arg3[%c0_3, %c0_4] : memref<32x1xf32, #tpu.memory_space<vmem>>, vector<32x1xf32>
    %5 = vector.broadcast %4 : vector<32x1xf32> to vector<32x128xf32>
    %6 = arith.addf %3, %5 : vector<32x128xf32>
    %cst_5 = arith.constant 0.000000e+00 : f32
    %7 = vector.broadcast %cst_5 : f32 to vector<32x128xf32>
    %8 = arith.maximumf %6, %7 : vector<32x128xf32>
    %c0_6 = arith.constant 0 : index
    %c0_7 = arith.constant 0 : index
    %9 = vector.load %arg4[%c0_6, %c0_7] : memref<32x32xbf16, #tpu.memory_space<vmem>>, vector<32x32xbf16>
    %10 = arith.truncf %8 : vector<32x128xf32> to vector<32x128xbf16>
    %cst_8 = arith.constant dense<0.000000e+00> : vector<32x128xf32>
    %11 = tpu.matmul %9, %10, %cst_8 {dimension_numbers = #tpu.dot_dimension_numbers<[1], [0], [0], [1], [0, 0, 1, 1], [], []>} : vector<32x32xbf16>, vector<32x128xbf16>, vector<32x128xf32> -> vector<32x128xf32>
    %c0_9 = arith.constant 0 : index
    %c0_10 = arith.constant 0 : index
    %12 = vector.load %arg5[%c0_9, %c0_10] : memref<32x1xf32, #tpu.memory_space<vmem>>, vector<32x1xf32>
    %13 = vector.broadcast %12 : vector<32x1xf32> to vector<32x128xf32>
    %14 = arith.addf %11, %13 : vector<32x128xf32>
    %cst_11 = arith.constant 0.000000e+00 : f32
    %15 = vector.broadcast %cst_11 : f32 to vector<32x128xf32>
    %16 = arith.maximumf %14, %15 : vector<32x128xf32>
    %c0_12 = arith.constant 0 : index
    %c0_13 = arith.constant 0 : index
    %17 = vector.load %arg6[%c0_12, %c0_13] : memref<4x32xbf16, #tpu.memory_space<vmem>>, vector<4x32xbf16>
    %18 = arith.truncf %16 : vector<32x128xf32> to vector<32x128xbf16>
    %cst_14 = arith.constant dense<0.000000e+00> : vector<4x128xf32>
    %19 = tpu.matmul %17, %18, %cst_14 {dimension_numbers = #tpu.dot_dimension_numbers<[1], [0], [0], [1], [0, 0, 1, 1], [], []>} : vector<4x32xbf16>, vector<32x128xbf16>, vector<4x128xf32> -> vector<4x128xf32>
    %c0_15 = arith.constant 0 : index
    %c0_16 = arith.constant 0 : index
    %20 = vector.load %arg7[%c0_15, %c0_16] : memref<4x1xf32, #tpu.memory_space<vmem>>, vector<4x1xf32>
    %21 = vector.broadcast %20 : vector<4x1xf32> to vector<4x128xf32>
    %22 = arith.addf %19, %21 : vector<4x128xf32>
    %23 = math.tanh %22 : vector<4x128xf32>
    %c0_17 = arith.constant 0 : index
    %c0_18 = arith.constant 0 : index
    %24 = vector.load %arg8[%c0_17, %c0_18] : memref<4x128xf32, #tpu.memory_space<vmem>>, vector<4x128xf32>
    tpu.vector_store %arg8[%c0_17, %c0_18], %23 {strides = array<i32>} : memref<4x128xf32, #tpu.memory_space<vmem>>, vector<4x128xf32>,
    return
  }
  func.func @transform_0(%arg0: i32) -> (i32, i32) {
    %c0_i32 = arith.constant 0 : i32
    %c0_i32_0 = arith.constant 0 : i32
    return %arg0, %c0_i32 : i32, i32
  }
  func.func @transform_1(%arg0: i32) -> (i32, i32) {
    %c0_i32 = arith.constant 0 : i32
    %c0_i32_0 = arith.constant 0 : i32
    %c0_i32_1 = arith.constant 0 : i32
    return %c0_i32, %c0_i32_0 : i32, i32
  }
  func.func @transform_2(%arg0: i32) -> (i32, i32) {
    %c0_i32 = arith.constant 0 : i32
    %c0_i32_0 = arith.constant 0 : i32
    %c0_i32_1 = arith.constant 0 : i32
    return %c0_i32, %c0_i32_0 : i32, i32
  }
  func.func @transform_3(%arg0: i32) -> (i32, i32) {
    %c0_i32 = arith.constant 0 : i32
    %c0_i32_0 = arith.constant 0 : i32
    %c0_i32_1 = arith.constant 0 : i32
    return %c0_i32, %c0_i32_0 : i32, i32
  }
  func.func @transform_4(%arg0: i32) -> (i32, i32) {
    %c0_i32 = arith.constant 0 : i32
    %c0_i32_0 = arith.constant 0 : i32
    %c0_i32_1 = arith.constant 0 : i32
    return %c0_i32, %c0_i32_0 : i32, i32
  }
  func.func @transform_5(%arg0: i32) -> (i32, i32) {
    %c0_i32 = arith.constant 0 : i32
    %c0_i32_0 = arith.constant 0 : i32
    %c0_i32_1 = arith.constant 0 : i32
    return %c0_i32, %c0_i32_0 : i32, i32
  }
  func.func @transform_6(%arg0: i32) -> (i32, i32) {
    %c0_i32 = arith.constant 0 : i32
    %c0_i32_0 = arith.constant 0 : i32
    %c0_i32_1 = arith.constant 0 : i32
    return %c0_i32, %c0_i32_0 : i32, i32
  }
  func.func @transform_7(%arg0: i32) -> (i32, i32) {
    %c0_i32 = arith.constant 0 : i32
    %c0_i32_0 = arith.constant 0 : i32
    return %c0_i32, %arg0 : i32, i32
  }
}

</mosaic_0001>

<bundles_post_ra>
// kernel: _actor_pallas.1
= control target key start
LH: loop header
LB: loop body
LE: loop exit
PB: predicated region body
PF: predicated region fallthrough
CT: control target
= control target key end

     0   :  { %vm89_vm0 = vcmask 130048   ;;  %v412_v3 = vmov 0   ;;  %vm213_vm1 = vcmask 261120   ;;  %vm414_vm2 = vmmov 0   ;;  %s569_s0 = inlined_call_operand.vmem [shape: f32[128,16], index: 0, kind: input, shape index: {}]   ;;  %s570_s1 = inlined_call_operand.vmem [shape: bf16[32,16], index: 1, kind: input, shape index: {}]   ;;  %s571_s2 = inlined_call_operand.vmem [shape: f32[32,1], index: 2, kind: input, shape index: {}]   ;;  %s572_s4 = inlined_call_operand.vmem [shape: f32[32,1], index: 4, kind: input, shape index: {}]   ;;  %s573_s6 = inlined_call_operand.vmem [shape: f32[4,1], index: 6, kind: input, shape index: {}]   ;;  %s574_s3 = inlined_call_operand.vmem [shape: bf16[32,32], index: 3, kind: input, shape index: {}]   ;;  %s575_s5 = inlined_call_operand.vmem [shape: bf16[4,32], index: 5, kind: input, shape index: {}]   ;;  %s576_s7 = inlined_call_operand.vmem [shape: f32[4,128], index: 7, kind: output, shape index: {}]  }
   0x1   :  { %v41_v0 = vld [vmem:[%s569_s0 + $0x70] sm:$0xff]  ;;  %v42_v1 = vld [vmem:[%s569_s0 + $0x78] sm:$0xff]  ;;  %v39_v2 = vld [vmem:[%s569_s0 + $0x60] sm:$0xff]  ;;  %404 = vset.pattern.permute.xlu0 %v412_v3  ;;  %405 = vset.pattern.permute.xlu1 %v412_v3 }
   0x2   :  { %v50_v4 = vpack.c.bf16 %v42_v1, %v41_v0  ;;  %v40_v5 = vld [vmem:[%s569_s0 + $0x68] sm:$0xff]  ;;  %v37_v8 = vld [vmem:[%s569_s0 + $0x50] sm:$0xff]  ;;  %v38_v9 = vld [vmem:[%s569_s0 + $0x58] sm:$0xff]  ;;  %v413_v0 = vmov 0.0  }
   0x3   :  { %v49_v6 = vpack.c.bf16 %v40_v5, %v39_v2  ;;  %v406_v10 = vld [vmem:[%s570_s1] sm:$0xff]   ;;  %v57_v11 = vld [vmem:[%s571_s2 + $0x10] sm:$0xff]  ;;  %v48_v14 = vpack.c.bf16 %v38_v9, %v37_v8  ;;  %v58_v15 = vld [vmem:[%s571_s2 + $0x18] sm:$0xff] }
   0x4   :  { %393 = vmatprep.subr.msk.bf16.mxu0 %vm89_vm0, %v50_v4  ;;  %v118_v7 = vsel %vm89_vm0, %v50_v4, 0  ;;  %373 = vmatprep.mubr.msk.bf16.mxu0 %vm89_vm0, %v406_v10  ;;  %v55_v12 = vld [vmem:[%s571_s2] sm:$0xff]  ;;  %v56_v16 = vld [vmem:[%s571_s2 + $0x8] sm:$0xff]  ;;  %v181_v17 = vld [vmem:[%s572_s4 + $0x10] sm:$0xff] }
   0x5   :  { %358 = vmatpush3.bf16.xpose.msra.mxu0 %v118_v7  ;;  %71 = vperm.xlu0 %404, %v57_v11   ;;  %v115_v13 = vsel %vm89_vm0, %v49_v6, 0  ;;  %v35_v18 = vld [vmem:[%s569_s0 + $0x40] sm:$0xff]  ;;  %v36_v19 = vld [vmem:[%s569_s0 + $0x48] sm:$0xff]  ;;  %v182_v20 = vld [vmem:[%s572_s4 + $0x18] sm:$0xff]  ;;  %v112_v21 = vsel %vm89_vm0, %v48_v14, 0 }
   0x6   :  { %394 = vmatprep.subr.msk.bf16.mxu0 %vm89_vm0, %v49_v6  ;;  %61 = vperm.xlu1 %405, %v55_v12   ;;  %v47_v22 = vpack.c.bf16 %v36_v19, %v35_v18  ;;  %v179_v23 = vld [vmem:[%s572_s4] sm:$0xff]  ;;  %v180_v24 = vld [vmem:[%s572_s4 + $0x8] sm:$0xff]  ;;  %v33_v26 = vld [vmem:[%s569_s0 + $0x30] sm:$0xff] }
   0x7   :  { %v276_v25 = vld [vmem:[%s573_s6] sm:$0xf]  ;;  %v34_v27 = vld [vmem:[%s569_s0 + $0x38] sm:$0xff]  ;;  %v32_v31 = vld [vmem:[%s569_s0 + $0x28] sm:$0xff] }
   0x8   :  { %v109_v28 = vsel %vm89_vm0, %v47_v22, 0  ;;  %v46_v29 = vpack.c.bf16 %v34_v27, %v33_v26  ;;  %v31_v30 = vld [vmem:[%s569_s0 + $0x20] sm:$0xff]  ;;  %v29_v34 = vld [vmem:[%s569_s0 + $0x10] sm:$0xff]  ;;  %v30_v35 = vld [vmem:[%s569_s0 + $0x18] sm:$0xff] }
   0x9   :  { %76 = vperm.xlu0 %404, %v58_v15   ;;  %v45_v33 = vpack.c.bf16 %v32_v31, %v31_v30  ;;  %v44_v37 = vpack.c.bf16 %v30_v35, %v29_v34  ;;  %v27_v38 = vld [vmem:[%s569_s0] sm:$0xff]  ;;  %v28_v39 = vld [vmem:[%s569_s0 + $0x8] sm:$0xff] }
   0xa   :  { %66 = vperm.xlu1 %405, %v56_v16   ;;  %v106_v32 = vsel %vm89_vm0, %v46_v29, 0  ;;  %v43_v41 = vpack.c.bf16 %v28_v39, %v27_v38  ;;  %v407_v43 = vld [vmem:[%s570_s1 + $0x8] sm:$0xff]   ;;  %v408_v44 = vld [vmem:[%s574_s3] sm:$0xff]  }
   0xb   :  { %v103_v36 = vsel %vm89_vm0, %v45_v33, 0  ;;  %v100_v40 = vsel %vm89_vm0, %v44_v37, 0  ;;  %381 = vmatprep.mubr.msk.bf16.mxu1 %vm213_vm1, %v408_v44  ;;  %v409_v63 = vld [vmem:[%s574_s3 + $0x8] sm:$0xff]   ;;  %v273_v19 = vld [vmem:[%s575_s5] sm:$0x3] }
   0xc   :  { %v97_v42 = vsel %vm89_vm0, %v43_v41, 0 }
   0xd   :  { %360 = vmatpush3.bf16.xpose.msra.mxu0 %v115_v13  ;;  %195 = vperm.xlu0 %404, %v181_v17  }
   0xe   :  { %395 = vmatprep.subr.msk.bf16.mxu0 %vm89_vm0, %v48_v14  ;;  %200 = vperm.xlu1 %405, %v182_v20  }
  0x11   :  { %185 = vperm.xlu0 %404, %v179_v23  }
  0x12   :  { %190 = vperm.xlu1 %405, %v180_v24  }
  0x15   :  { %362 = vmatpush3.bf16.xpose.msra.mxu0 %v112_v21  ;;  %279 = vperm.xlu0 %404, %v276_v25  }
  0x16   :  { %396 = vmatprep.subr.msk.bf16.mxu0 %vm89_vm0, %v47_v22 }
  0x1d   :  { %364 = vmatpush3.bf16.xpose.msra.mxu0 %v109_v28 }
  0x1e   :  { %397 = vmatprep.subr.msk.bf16.mxu0 %vm89_vm0, %v46_v29 }
  0x25   :  { %366 = vmatpush3.bf16.xpose.msra.mxu0 %v106_v32 }
  0x26   :  { %398 = vmatprep.subr.msk.bf16.mxu0 %vm89_vm0, %v45_v33 }
  0x2d   :  { %368 = vmatpush3.bf16.xpose.msra.mxu0 %v103_v36 }
  0x2e   :  { %399 = vmatprep.subr.msk.bf16.mxu0 %vm89_vm0, %v44_v37 }
  0x35   :  { %370 = vmatpush3.bf16.xpose.msra.mxu0 %v100_v40 }
  0x36   :  { %400 = vmatprep.subr.msk.bf16.mxu0 %vm89_vm0, %v43_v41 }
  0x3d   :  { %372 = vmatpush3.bf16.xpose.msra.mxu0 %v97_v42 }
  0x44   :  { %374 = vmatmul.mubr.msk.bf16.vlgmr.msra.gmra.mxu0 %vm89_vm0, %v407_v43 }
  0x80   :  { %v72_v45 = vpop.permute.xlu0 %71 }
  0x81   :  { %v62_v46 = vpop.permute.xlu1 %61 }
  0x84   :  { %v77_v50 = vpop.permute.xlu0 %76 }
  0x85   :  { %v67_v54 = vpop.permute.xlu1 %66 }
  0x88   :  { %v196_v1 = vpop.permute.xlu0 %195 }
  0x89   :  { %v201_v2 = vpop.permute.xlu1 %200 }
  0x8c   :  { %v186_v7 = vpop.permute.xlu0 %185 }
  0x8d   :  { %v191_v9 = vpop.permute.xlu1 %190 }
  0x90   :  { %v280_v20 = vpop.permute.xlu0 %279 }
 0x104   :  { %v375_v47 = vpop.f32.mrf.mxu0 }
 0x105   :  { %v163_v49 = vadd.f32 %v375_v47, %v72_v45 }
 0x106   :  { %v154_v48 = vpop.f32.mrf.mxu0 }
 0x107   :  { %v155_v52 = vadd.f32 %v154_v48, %v62_v46  ;;  %v171_v56 = vmax.f32 %v163_v49, 0.0 }
 0x108   :  { %v376_v51 = vpop.f32.mrf.mxu0 }
 0x109   :  { %v166_v53 = vadd.f32 %v376_v51, %v77_v50  ;;  %v169_v59 = vmax.f32 %v155_v52, 0.0 }
 0x10a   :  { %v157_v55 = vpop.f32.mrf.mxu0 }
 0x10b   :  { %v172_v57 = vmax.f32 %v166_v53, 0.0  ;;  %v158_v58 = vadd.f32 %v157_v55, %v67_v54 }
 0x10d   :  { %v170_v60 = vmax.f32 %v158_v58, 0.0  ;;  %v178_v61 = vpack.c.bf16 %v172_v57, %v171_v56 }
 0x10f   :  { %v177_v62 = vpack.c.bf16 %v170_v60, %v169_v59  ;;  %377 = vmatprep.subr.bf16.mxu1 %v178_v61 }
 0x110   :  { %378 = vmatpush3.bf16.msra.mxu1 %v178_v61 }
 0x111   :  { %379 = vmatprep.subr.bf16.mxu1 %v177_v62 }
 0x114   :  { %380 = vmatpush3.bf16.msra.mxu1 %v177_v62 }
 0x115   :  { %385 = vmatprep.subr.bf16.mxu1 %v413_v0 }
 0x117   :  { %382 = vmatmul.mubr.msk.bf16.vlgmr.msra.gmra.mxu1 %vm213_vm1, %v409_v63 }
 0x118   :  { %389 = vmatprep.mubr.msk.bf16.mxu1 %vm414_vm2, %v413_v0 }
 0x1d7   :  { %v383_v3 = vpop.f32.mrf.mxu1 }
 0x1d8   :  { %v263_v5 = vadd.f32 %v383_v3, %v196_v1 }
 0x1d9   :  { %v254_v4 = vpop.f32.mrf.mxu1 }
 0x1da   :  { %v271_v11 = vmax.f32 %v263_v5, 0.0  ;;  %v255_v12 = vadd.f32 %v254_v4, %v186_v7 }
 0x1db   :  { %v384_v6 = vpop.f32.mrf.mxu1 }
 0x1dc   :  { %v266_v8 = vadd.f32 %v384_v6, %v201_v2  ;;  %v269_v17 = vmax.f32 %v255_v12, 0.0 }
 0x1dd   :  { %v257_v10 = vpop.f32.mrf.mxu1 }
 0x1de   :  { %v272_v13 = vmax.f32 %v266_v8, 0.0  ;;  %v258_v14 = vadd.f32 %v257_v10, %v191_v9 }
 0x1e0   :  { %v275_v15 = vpack.c.bf16 %v272_v13, %v271_v11  ;;  %v270_v16 = vmax.f32 %v258_v14, 0.0 }
 0x1e2   :  { %386 = vmatpush3.bf16.msra.mxu1 %v275_v15  ;;  %v274_v18 = vpack.c.bf16 %v270_v16, %v269_v17 }
 0x1e3   :  { %387 = vmatprep.subr.bf16.mxu1 %v413_v0 }
 0x1e6   :  { %388 = vmatpush3.bf16.msra.mxu1 %v274_v18 }
 0x1e9   :  { %390 = vmatmul.mubr.msk.bf16.vlgmr.msra.gmra.mxu1 %vm213_vm1, %v273_v19 }
 0x2a9   :  { %v319_v21 = vpop.f32.mrf.mxu1 }
 0x2aa   :  { %v320_v22 = vadd.f32 %v319_v21, %v280_v20 }
 0x2ab   :  { %v391_v23 = vpop.f32.mrf.mxu1 }
 0x2ac   :  { %410 = vtanh.f32 %v320_v22 }
 0x2ad   :  { %v322_v24 = vpop.f32.mrf.mxu1 }
 0x2af   :  { %v392_v25 = vpop.f32.mrf.mxu1 }
 0x2b9   :  { %v411_v26 = vpop.eup %410 }
 0x2ba   :  { %326 = vst [vmem:[%s576_s7] sm:$0xf] %v411_v26 }

</bundles_post_ra>
